<compile_context>
chip_gen: v6e
topology: v6e:2x2x1
jax: 0.10.0
libtpu: 0.0.40
codegen_flags: <defaults>
</compile_context>

<pallas_src>
import functools

import jax
import jax.numpy as jnp
from jax.experimental import pallas as pl
from jax.experimental.pallas import tpu as pltpu


def _lstm_cell_kernel(th, x_ref, wx_ref, h_ref, wh_ref, b_ref, c_ref,
                      h_out_ref, c_out_ref):
    """One (batch-tile, hid-tile) step: two MXU dots + gate math, all f32.

    Weight columns for this hid-tile are gate-blocked as [f | i | o | g],
    each of width `th`.
    """
    gates = (jnp.dot(x_ref[...], wx_ref[...], preferred_element_type=jnp.float32)
             + jnp.dot(h_ref[...], wh_ref[...], preferred_element_type=jnp.float32)
             + b_ref[...])
    f = jax.nn.sigmoid(gates[:, 0 * th:1 * th])   # a_fg = sigmoid
    i = jax.nn.sigmoid(gates[:, 1 * th:2 * th])   # a_ig = sigmoid
    o = jax.nn.sigmoid(gates[:, 2 * th:3 * th])   # a_og = sigmoid
    g = jnp.tanh(gates[:, 3 * th:4 * th])         # a_i  = tanh
    c_next = f * c_ref[...] + i * g
    h_out_ref[...] = o * jnp.tanh(c_next)         # a_h  = tanh
    c_out_ref[...] = c_next


def prepare_lstm_params(params, *, hid_tile=None, dtype=jnp.float32):
    """One-time layout glue (call once per model, NOT per timestep).

    Builds gate-blocked fused weights:
      wx: [D, nt*4*th]   wh: [H, nt*4*th]   b: [1, nt*4*th]
    where hid-tile `t` owns columns [t*4*th : (t+1)*4*th] = [Wf_t|Wi_t|Wo_t|Wg_t].
    Pass dtype=jnp.bfloat16 for large D+H on v6e/v7x (keeps f32 accumulation).
    """
    (w_fg, w_ig, w_og, w_ci,
     r_fg, r_ig, r_og, r_ci,
     b_fg, b_ig, b_og, b_ci) = params
    hid, D = w_fg.shape

    if hid_tile is None:
        # 128-lane-aligned tiles when possible, otherwise a single full tile.
        hid_tile = 128 if (hid > 128 and hid % 128 == 0) else hid
    th = hid_tile
    assert hid % th == 0, "hid_tile must divide hidden_size"
    nt = hid // th

    def blocked(ws, k):
        w4 = jnp.stack([w.T for w in ws], axis=1)             # (k, 4, hid)
        w4 = w4.reshape(k, 4, nt, th).transpose(0, 2, 1, 3)   # (k, nt, 4, th)
        return w4.reshape(k, nt * 4 * th).astype(dtype)

    wx = blocked([w_fg, w_ig, w_og, w_ci], D)
    wh = blocked([r_fg, r_ig, r_og, r_ci], hid)
    b4 = jnp.stack([b_fg, b_ig, b_og, b_ci], axis=0)          # (4, hid)
    b = (b4.reshape(4, nt, th).transpose(1, 0, 2)
           .reshape(1, nt * 4 * th).astype(jnp.float32))
    return dict(wx=wx, wh=wh, b=b, th=th, nt=nt, hid=hid, D=D)


def lstm_cell_pallas(xt, cx, hx, fused, *, batch_tile=128):
    """Matches LSTMCell.forward(xt, cx, hx) -> (ht, ct). `fused` from prepare_lstm_params."""
    B, D = xt.shape
    hid, th, nt = fused["hid"], fused["th"], fused["nt"]
    wx, wh, b = fused["wx"], fused["wh"], fused["b"]

    # Balanced batch tiling: round_up(cdiv(B, n_tiles), 8), tile cap `batch_tile`.
    nb = pl.cdiv(B, batch_tile)
    tb = ((pl.cdiv(B, nb) + 7) // 8) * 8
    nb = pl.cdiv(B, tb)
    Bp = nb * tb

    x = xt.astype(wx.dtype)
    h = hx.astype(wh.dtype)
    c = cx.astype(jnp.float32)
    if Bp != B:
        x = jnp.pad(x, ((0, Bp - B), (0, 0)))
        h = jnp.pad(h, ((0, Bp - B), (0, 0)))
        c = jnp.pad(c, ((0, Bp - B), (0, 0)))

    # Rough per-step VMEM budget (double-buffered in/out tiles) with 2x headroom.
    itemsize = jnp.dtype(wx.dtype).itemsize
    est = 2 * (itemsize * (tb * D + tb * hid + (D + hid) * 4 * th)
               + 4 * (4 * th + 3 * tb * th))
    vmem_limit = int(min(100 << 20, max(8 << 20, 2 * est)))

    kernel = functools.partial(_lstm_cell_kernel, th)
    h_next, c_next = pl.pallas_call(
        kernel,
        out_shape=(jax.ShapeDtypeStruct((Bp, hid), jnp.float32),
                   jax.ShapeDtypeStruct((Bp, hid), jnp.float32)),
        grid_spec=pltpu.PrefetchScalarGridSpec(
            num_scalar_prefetch=0,
            grid=(nb, nt),
            in_specs=[
                pl.BlockSpec((tb, D), lambda bi, hi: (bi, 0)),        # x rows
                pl.BlockSpec((D, 4 * th), lambda bi, hi: (0, hi)),    # Wx tile
                pl.BlockSpec((tb, hid), lambda bi, hi: (bi, 0)),      # h rows
                pl.BlockSpec((hid, 4 * th), lambda bi, hi: (0, hi)),  # Wh tile
                pl.BlockSpec((1, 4 * th), lambda bi, hi: (0, hi)),    # bias tile
                pl.BlockSpec((tb, th), lambda bi, hi: (bi, hi)),      # c_cur tile
            ],
            out_specs=(
                pl.BlockSpec((tb, th), lambda bi, hi: (bi, hi)),      # h_next
                pl.BlockSpec((tb, th), lambda bi, hi: (bi, hi)),      # c_next
            ),
        ),
        compiler_params=pltpu.CompilerParams(
            dimension_semantics=("parallel", "parallel"),
            vmem_limit_bytes=vmem_limit),
    )(x, wx, h, wh, b, c)

    if Bp != B:
        h_next = h_next[:B]
        c_next = c_next[:B]
    return h_next, c_next


def lstm_cell_ref(xt, cx, hx, params):
    """Pure-JAX reference matching the PyTorch forward exactly."""
    (w_fg, w_ig, w_og, w_ci,
     r_fg, r_ig, r_og, r_ci,
     b_fg, b_ig, b_og, b_ci) = params
    ft = jax.nn.sigmoid(xt @ w_fg.T + hx @ r_fg.T + b_fg)
    it = jax.nn.sigmoid(xt @ w_ig.T + hx @ r_ig.T + b_ig)
    ot = jax.nn.sigmoid(xt @ w_og.T + hx @ r_og.T + b_og)
    ct = ft * cx + it * jnp.tanh(xt @ w_ci.T + hx @ r_ci.T + b_ci)
    ht = ot * jnp.tanh(ct)
    return ht, ct


if __name__ == "__main__":
    # LSTMCell(input_size=16, hidden_size=32, bias=True), batch=2
    B, D, hid = 2, 16, 32

    key = jax.random.PRNGKey(0)
    keys = jax.random.split(key, 15)

    xt = jax.random.normal(keys[0], (B, D), jnp.float32)
    hx = jax.random.normal(keys[1], (B, hid), jnp.float32)
    cx = jax.random.normal(keys[2], (B, hid), jnp.float32)

    # reset_parameters(): U(-1/sqrt(hidden_size), 1/sqrt(hidden_size))
    stdv = 1.0 / (hid ** 0.5)
    u = lambda k, shape: jax.random.uniform(k, shape, jnp.float32, -stdv, stdv)
    w_fg, w_ig, w_og, w_ci = (u(keys[3 + j], (hid, D)) for j in range(4))
    r_fg, r_ig, r_og, r_ci = (u(keys[7 + j], (hid, hid)) for j in range(4))
    b_fg, b_ig, b_og, b_ci = (u(keys[11 + j], (hid,)) for j in range(4))
    params = (w_fg, w_ig, w_og, w_ci, r_fg, r_ig, r_og, r_ci,
              b_fg, b_ig, b_og, b_ci)

    # One-time weight fusion (per model, not per timestep).
    fused = prepare_lstm_params(params)
    jax.block_until_ready(jax.tree_util.tree_leaves(fused))

    h_next, c_next = lstm_cell_pallas(xt, cx, hx, fused)
    jax.block_until_ready((h_next, c_next))

    h_ref, c_ref = lstm_cell_ref(xt, cx, hx, params)
    err = max(float(jnp.max(jnp.abs(h_next - h_ref))),
              float(jnp.max(jnp.abs(c_next - c_ref))))
    assert err < 1e-4, err

    print("KERNEL_OK")
</pallas_src>

<mosaic_0001>
module attributes {stable_mosaic.version = 11 : i64} {
  func.func @_lstm_cell_kernel(%arg0: i32, %arg1: i32, %arg2: memref<8x16xf32, #tpu.memory_space<vmem>>, %arg3: memref<16x128xf32, #tpu.memory_space<vmem>>, %arg4: memref<8x32xf32, #tpu.memory_space<vmem>>, %arg5: memref<32x128xf32, #tpu.memory_space<vmem>>, %arg6: memref<1x128xf32, #tpu.memory_space<vmem>>, %arg7: memref<8x32xf32, #tpu.memory_space<vmem>>, %arg8: memref<8x32xf32, #tpu.memory_space<vmem>>, %arg9: memref<8x32xf32, #tpu.memory_space<vmem>>) attributes {dimension_semantics = [#tpu.dimension_semantics<parallel>, #tpu.dimension_semantics<parallel>], iteration_bounds = array<i64: 1, 1>, scalar_prefetch = 0 : i64, scratch_operands = 0 : i64, tpu.core_type = #tpu.core_type<tc>, window_params = [{transform_indices = @transform_0, window_bounds = array<i64: 8, 16>}, {transform_indices = @transform_1, window_bounds = array<i64: 16, 128>}, {transform_indices = @transform_2, window_bounds = array<i64: 8, 32>}, {transform_indices = @transform_3, window_bounds = array<i64: 32, 128>}, {transform_indices = @transform_4, window_bounds = array<i64: 1, 128>}, {transform_indices = @transform_5, window_bounds = array<i64: 8, 32>}, {transform_indices = @transform_6, window_bounds = array<i64: 8, 32>}, {transform_indices = @transform_7, window_bounds = array<i64: 8, 32>}]} {
    %c0 = arith.constant 0 : index
    %c0_0 = arith.constant 0 : index
    %0 = vector.load %arg2[%c0, %c0_0] : memref<8x16xf32, #tpu.memory_space<vmem>>, vector<8x16xf32>
    %c0_1 = arith.constant 0 : index
    %c0_2 = arith.constant 0 : index
    %1 = vector.load %arg3[%c0_1, %c0_2] : memref<16x128xf32, #tpu.memory_space<vmem>>, vector<16x128xf32>
    %cst = arith.constant dense<0.000000e+00> : vector<8x128xf32>
    %2 = tpu.matmul %0, %1, %cst {dimension_numbers = #tpu.dot_dimension_numbers<[1], [0], [0], [1], [0, 0, 1, 1], [], []>} : vector<8x16xf32>, vector<16x128xf32>, vector<8x128xf32> -> vector<8x128xf32>
    %c0_3 = arith.constant 0 : index
    %c0_4 = arith.constant 0 : index
    %3 = vector.load %arg4[%c0_3, %c0_4] : memref<8x32xf32, #tpu.memory_space<vmem>>, vector<8x32xf32>
    %c0_5 = arith.constant 0 : index
    %c0_6 = arith.constant 0 : index
    %4 = vector.load %arg5[%c0_5, %c0_6] : memref<32x128xf32, #tpu.memory_space<vmem>>, vector<32x128xf32>
    %cst_7 = arith.constant dense<0.000000e+00> : vector<8x128xf32>
    %5 = tpu.matmul %3, %4, %cst_7 {dimension_numbers = #tpu.dot_dimension_numbers<[1], [0], [0], [1], [0, 0, 1, 1], [], []>} : vector<8x32xf32>, vector<32x128xf32>, vector<8x128xf32> -> vector<8x128xf32>
    %6 = arith.addf %2, %5 : vector<8x128xf32>
    %c0_8 = arith.constant 0 : index
    %c0_9 = arith.constant 0 : index
    %7 = vector.load %arg6[%c0_8, %c0_9] : memref<1x128xf32, #tpu.memory_space<vmem>>, vector<1x128xf32>
    %8 = vector.broadcast %7 : vector<1x128xf32> to vector<8x128xf32>
    %9 = arith.addf %6, %8 : vector<8x128xf32>
    %10 = vector.extract_strided_slice %9 {offsets = [0, 0], sizes = [8, 32], strides = [1, 1]} : vector<8x128xf32> to vector<8x32xf32>
    %11 = arith.negf %10 : vector<8x32xf32>
    %12 = math.exp %11 : vector<8x32xf32>
    %cst_10 = arith.constant 1.000000e+00 : f32
    %13 = vector.broadcast %cst_10 : f32 to vector<8x32xf32>
    %14 = arith.addf %13, %12 : vector<8x32xf32>
    %15 = arith.divf %13, %14 : vector<8x32xf32>
    %16 = vector.extract_strided_slice %9 {offsets = [0, 32], sizes = [8, 32], strides = [1, 1]} : vector<8x128xf32> to vector<8x32xf32>
    %17 = arith.negf %16 : vector<8x32xf32>
    %18 = math.exp %17 : vector<8x32xf32>
    %cst_11 = arith.constant 1.000000e+00 : f32
    %19 = vector.broadcast %cst_11 : f32 to vector<8x32xf32>
    %20 = arith.addf %19, %18 : vector<8x32xf32>
    %21 = arith.divf %19, %20 : vector<8x32xf32>
    %22 = vector.extract_strided_slice %9 {offsets = [0, 64], sizes = [8, 32], strides = [1, 1]} : vector<8x128xf32> to vector<8x32xf32>
    %23 = arith.negf %22 : vector<8x32xf32>
    %24 = math.exp %23 : vector<8x32xf32>
    %cst_12 = arith.constant 1.000000e+00 : f32
    %25 = vector.broadcast %cst_12 : f32 to vector<8x32xf32>
    %26 = arith.addf %25, %24 : vector<8x32xf32>
    %27 = arith.divf %25, %26 : vector<8x32xf32>
    %28 = vector.extract_strided_slice %9 {offsets = [0, 96], sizes = [8, 32], strides = [1, 1]} : vector<8x128xf32> to vector<8x32xf32>
    %29 = math.tanh %28 : vector<8x32xf32>
    %c0_13 = arith.constant 0 : index
    %c0_14 = arith.constant 0 : index
    %30 = vector.load %arg7[%c0_13, %c0_14] : memref<8x32xf32, #tpu.memory_space<vmem>>, vector<8x32xf32>
    %31 = arith.mulf %15, %30 : vector<8x32xf32>
    %32 = arith.mulf %21, %29 : vector<8x32xf32>
    %33 = arith.addf %31, %32 : vector<8x32xf32>
    %34 = math.tanh %33 : vector<8x32xf32>
    %35 = arith.mulf %27, %34 : vector<8x32xf32>
    %c0_15 = arith.constant 0 : index
    %c0_16 = arith.constant 0 : index
    %36 = vector.load %arg8[%c0_15, %c0_16] : memref<8x32xf32, #tpu.memory_space<vmem>>, vector<8x32xf32>
    tpu.vector_store %arg8[%c0_15, %c0_16], %35 {strides = array<i32>} : memref<8x32xf32, #tpu.memory_space<vmem>>, vector<8x32xf32>,
    %c0_17 = arith.constant 0 : index
    %c0_18 = arith.constant 0 : index
    %37 = vector.load %arg9[%c0_17, %c0_18] : memref<8x32xf32, #tpu.memory_space<vmem>>, vector<8x32xf32>
    tpu.vector_store %arg9[%c0_17, %c0_18], %33 {strides = array<i32>} : memref<8x32xf32, #tpu.memory_space<vmem>>, vector<8x32xf32>,
    return
  }
  func.func @transform_0(%arg0: i32, %arg1: i32) -> (i32, i32) {
    %c0_i32 = arith.constant 0 : i32
    %c0_i32_0 = arith.constant 0 : i32
    return %arg0, %c0_i32 : i32, i32
  }
  func.func @transform_1(%arg0: i32, %arg1: i32) -> (i32, i32) {
    %c0_i32 = arith.constant 0 : i32
    %c0_i32_0 = arith.constant 0 : i32
    return %c0_i32, %arg1 : i32, i32
  }
  func.func @transform_2(%arg0: i32, %arg1: i32) -> (i32, i32) {
    %c0_i32 = arith.constant 0 : i32
    %c0_i32_0 = arith.constant 0 : i32
    return %arg0, %c0_i32 : i32, i32
  }
  func.func @transform_3(%arg0: i32, %arg1: i32) -> (i32, i32) {
    %c0_i32 = arith.constant 0 : i32
    %c0_i32_0 = arith.constant 0 : i32
    return %c0_i32, %arg1 : i32, i32
  }
  func.func @transform_4(%arg0: i32, %arg1: i32) -> (i32, i32) {
    %c0_i32 = arith.constant 0 : i32
    %c0_i32_0 = arith.constant 0 : i32
    return %c0_i32, %arg1 : i32, i32
  }
  func.func @transform_5(%arg0: i32, %arg1: i32) -> (i32, i32) {
    %c0_i32 = arith.constant 0 : i32
    return %arg0, %arg1 : i32, i32
  }
  func.func @transform_6(%arg0: i32, %arg1: i32) -> (i32, i32) {
    %c0_i32 = arith.constant 0 : i32
    return %arg0, %arg1 : i32, i32
  }
  func.func @transform_7(%arg0: i32, %arg1: i32) -> (i32, i32) {
    %c0_i32 = arith.constant 0 : i32
    return %arg0, %arg1 : i32, i32
  }
}

</mosaic_0001>

<bundles_post_ra>
// kernel: tpu_custom_call.1
= control target key start
LH: loop header
LB: loop body
LE: loop exit
PB: predicated region body
PF: predicated region fallthrough
CT: control target
= control target key end

     0   :  { %13 = vsyncpa [#allocation3], 0  ;;  %s572_s0 = inlined_call_operand.hbm [shape: f32[8,16], index: 0, kind: input, shape index: {}]   ;;  %s573_s1 = inlined_call_operand.hbm [shape: f32[16,128], index: 1, kind: input, shape index: {}]   ;;  %s574_s2 = inlined_call_operand.hbm [shape: f32[8,32], index: 2, kind: input, shape index: {}]   ;;  %s575_s3 = inlined_call_operand.hbm [shape: f32[32,128], index: 3, kind: input, shape index: {}]   ;;  %s576_s4 = inlined_call_operand.vmem [shape: f32[1,128], index: 4, kind: input, shape index: {}]   ;;  %s577_s5 = inlined_call_operand.vmem [shape: f32[8,32], index: 5, kind: input, shape index: {}]   ;;  %s578_s6 = inlined_call_operand.hbm [shape: f32[8,32], index: 6, kind: output, shape index: {0}]   ;;  %s579_s7 = inlined_call_operand.hbm [shape: f32[8,32], index: 7, kind: output, shape index: {1}]  }
   0x1   :  { %14 = vsyncpa [#allocation6], 0 }
   0x2   :  { %15 = vsyncpa [#allocation9], 0 }
   0x3   :  { %16 = vsyncpa [#allocation4], 0 }
   0x4   :  { %17 = vsyncpa [#allocation12], 0  ;;  %s484_s24 = smov [#allocation5]  }
   0x5   :  { %s33_s25 = sshll.u32 %s484_s24, 4  ;;  %s34_s25 = int_to_ptr.vmem [resolvable:$true] %s33_s25 }
   0x6   :  { %s362_s26 = scalar_lea.vmem %s34_s25, 256  ;;  %p367_p1 = scmp.lt.s32.totalorder %s34_s25, %s34_s25 }
   0x7   :  { %p363_p0 = scmp.ne.s32.totalorder %s34_s25, %s362_s26  ;;  %p368_p2 = scmp.lt.s32.totalorder %s362_s26, %s362_s26 }
   0x9   :  { %p369_p3 = por %p368_p2, %p367_p1 }
   0xb   :  { %p370_p4 = pnand %p369_p3, %p363_p0 }
   0xd   :  { %373 = shalt.err (!%p370_p4)
}
   0xe   :  { %s485_s27 = smov 128   ;;  %s486_s28 = smov 8  }
   0xf   :  { %39 = dma.hbm_to_vmem [thread:$0]  %s573_s1, 256, %s34_s25, [#allocation6], %s485_s27, %s485_s27, %s486_s28  }
  0x10   :  { %s487_s8 = smov [#allocation2]   ;;  %s488_s10 = smov [#allocation7]  }
  0x11   :  { %s24_s9 = sshll.u32 %s487_s8, 4  ;;  %s46_s11 = sshll.u32 %s488_s10, 4  ;;  %s25_s9 = int_to_ptr.vmem [resolvable:$true] %s24_s9  ;;  %s47_s11 = int_to_ptr.vmem [resolvable:$true] %s46_s11 }
  0x12   :  { %s382_s12 = scalar_lea.vmem %s25_s9, 128  ;;  %p387_p6 = scmp.lt.s32.totalorder %s25_s9, %s25_s9 }
  0x13   :  { %p383_p5 = scmp.ne.s32.totalorder %s25_s9, %s382_s12  ;;  %p388_p7 = scmp.lt.s32.totalorder %s382_s12, %s382_s12 }
  0x15   :  { %p389_p8 = por %p388_p7, %p387_p6 }
  0x17   :  { %p390_p9 = pnand %p389_p8, %p383_p5 }
  0x19   :  { %393 = shalt.err (!%p390_p9)
}
  0x1a   :  { %27 = dma.hbm_to_vmem [thread:$0]  %s572_s0, 128, %s25_s9, [#allocation3]  }
  0x1b   :  { %s402_s15 = scalar_lea.vmem %s47_s11, 128  ;;  %p407_p11 = scmp.lt.s32.totalorder %s47_s11, %s47_s11 }
  0x1c   :  { %p403_p10 = scmp.ne.s32.totalorder %s47_s11, %s402_s15  ;;  %p408_p12 = scmp.lt.s32.totalorder %s402_s15, %s402_s15 }
  0x1e   :  { %p409_p13 = por %p408_p12, %p407_p11 }
  0x20   :  { %p410_p0 = pnand %p409_p13, %p403_p10 }
  0x22   :  { %413 = shalt.err (!%p410_p0)
}
  0x23   :  { %49 = dma.hbm_to_vmem [thread:$0]  %s574_s2, 128, %s47_s11, [#allocation6]  }
  0x24   :  { %s489_s17 = smov [#allocation8]  }
  0x25   :  { %s55_s18 = sshll.u32 %s489_s17, 4  ;;  %s56_s18 = int_to_ptr.vmem [resolvable:$true] %s55_s18 }
  0x26   :  { %s422_s19 = scalar_lea.vmem %s56_s18, 512  ;;  %p427_p2 = scmp.lt.s32.totalorder %s56_s18, %s56_s18 }
  0x27   :  { %p423_p1 = scmp.ne.s32.totalorder %s56_s18, %s422_s19  ;;  %p428_p3 = scmp.lt.s32.totalorder %s422_s19, %s422_s19 }
  0x29   :  { %p429_p4 = por %p428_p3, %p427_p2 }
  0x2b   :  { %p430_p5 = pnand %p429_p4, %p423_p1 }
  0x2d   :  { %433 = shalt.err (!%p430_p5)
}
  0x2e   :  { %61 = dma.hbm_to_vmem [thread:$0]  %s575_s3, 512, %s56_s18, [#allocation9], %s485_s27, %s485_s27, %s486_s28  }
  0x2f   :  { %474 = dma.done.wait [#allocation3], 128  }
  0x30   :  { %475 = vsyncadd [#allocation3], 4294967168 }
  0x31   :  { %476 = dma.done.wait [#allocation6], 384  }
  0x32   :  { %477 = vsyncadd [#allocation6], 4294966912 }
  0x33   :  { %478 = dma.done.wait [#allocation9], 512  }
  0x34   :  { %479 = vsyncadd [#allocation9], 4294966784  ;;  %v490_v0 = vmov 0.0   ;;  %vm491_vm0 = vmmov 0   ;;  %v85_v1 = vld [vmem:[#allocation8 + $0x18] sm:$0xff]  ;;  %v84_v2 = vld [vmem:[#allocation8 + $0x10] sm:$0xff] }
  0x35   :  { %316 = vmatprep.subr.mxu0 %v490_v0  ;;  %327 = vmatprep.subr.mxu1 %v490_v0  ;;  %v80_v3 = vld [vmem:[#allocation5 + $0x8] sm:$0xff]  ;;  %v79_v4 = vld [vmem:[#allocation5] sm:$0xff]  ;;  %v78_v5 = vld [vmem:[#allocation2] sm:$0xff]  ;;  %vm160_vm1 = vcmask 130048   ;;  %vm86_vm2 = vcmask 261120   ;;  %s492_s21 = smov 64  }
  0x36   :  { %331 = vmatprep.mubr.msk.f32.mxu1 %vm491_vm0, %v490_v0  ;;  %324 = vmatprep.mubr.msk.f32.mxu0 %vm491_vm0, %v490_v0  ;;  %v83_v6 = vld [vmem:[#allocation8 + $0x8] sm:$0xff]  ;;  %v82_v7 = vld [vmem:[#allocation8] sm:$0xff]  ;;  %v81_v8 = vld [vmem:[#allocation7] sm:$0xff]  ;;  %s493_s22 = smov 96   ;;  %s494_s24 = smov [#allocation11]  }
  0x37   :  { %317 = vmatpush3.msra.mxu0 %v85_v1  ;;  %328 = vmatpush3.msra.mxu1 %v80_v3  ;;  %v306_v12 = vld [vmem:[%s576_s4] ss:$0 sm:$0xff]  ;;  %s289_s25 = sshll.u32 %s494_s24, 4  ;;  %s290_s25 = int_to_ptr.vmem [resolvable:$true] %s289_s25 }
  0x38   :  { %318 = vmatprep.subr.mxu0 %v490_v0  ;;  %329 = vmatprep.subr.mxu1 %v490_v0  ;;  %v249_v23 = vld [vmem:[%s577_s5] sm:$0xff]  ;;  %s434_s26 = scalar_lea.vmem %s290_s25, 128  ;;  %p439_p7 = scmp.lt.s32.totalorder %s290_s25, %s290_s25 }
  0x39   :  { %319 = vmatpush3.msra.mxu0 %v84_v2  ;;  %330 = vmatpush3.msra.mxu1 %v79_v4  ;;  %p435_p6 = scmp.ne.s32.totalorder %s290_s25, %s434_s26  ;;  %p440_p8 = scmp.lt.s32.totalorder %s434_s26, %s434_s26 }
  0x3a   :  { %320 = vmatprep.subr.mxu0 %v490_v0  ;;  %332 = vmatmul.mubr.msk.f32.vlgmr.msra.gmra.mxu1 %vm160_vm1, %v78_v5 }
  0x3b   :  { %321 = vmatpush3.msra.mxu0 %v83_v6  ;;  %p441_p9 = por %p440_p8, %p439_p7 }
  0x3c   :  { %322 = vmatprep.subr.mxu0 %v490_v0 }
  0x3d   :  { %323 = vmatpush3.msra.mxu0 %v82_v7  ;;  %p442_p10 = pnand %p441_p9, %p435_p6 }
  0x3e   :  { %325 = vmatmul.mubr.msk.f32.vlgmr.msra.gmra.mxu0 %vm86_vm2, %v81_v8 }
  0xfa   :  { %v230_v9 = vpop.f32.mrf.mxu1 }
  0xfc   :  { %v333_v10 = vpop.f32.mrf.mxu1 }
  0xfe   :  { %v156_v11 = vpop.f32.mrf.mxu0 }
  0xff   :  { %v231_v13 = vadd.f32 %v230_v9, %v156_v11 }
 0x100   :  { %v326_v14 = vpop.f32.mrf.mxu0 }
 0x101   :  { %v241_v15 = vadd.f32 %v306_v12, %v231_v13 }
 0x103   :  { %346 = vtanh.f32 %v241_v15  ;;  %v307_v17 = vmul.f32 -1.442695, %v241_v15 }
 0x105   :  { %348 = vpow2.f32 %v307_v17 }
 0x110   :  { %v347_v16 = vpop.eup %346 }
 0x111   :  { %252 = vrot.lane.b32.xlu0 %v347_v16, %s492_s21 }
 0x112   :  { %v349_v18 = vpop.eup %348 }
 0x113   :  { %v245_v19 = vadd.f32 1.0, %v349_v18 }
 0x115   :  { %350 = vrcp.f32 %v245_v19 }
 0x122   :  { %v351_v20 = vpop.eup %350 }
 0x123   :  { %v250_v24 = vmul.f32 %v351_v20, %v249_v23 }
 0x183   :  { %v253_v21 = vpop.permute.xlu0 %252 }
 0x184   :  { %v255_v22 = vmul.f32 %v351_v20, %v253_v21 }
 0x186   :  { %257 = vrot.lane.b32.xlu0 %v255_v22, %s493_s22 }
 0x1f8   :  { %v258_v25 = vpop.permute.xlu0 %257 }
 0x1f9   :  { %v260_v26 = vadd.f32 %v258_v25, %v250_v24 }
 0x1fb   :  { %352 = vtanh.f32 %v260_v26  ;;  %272 = vst.msk [vmem:[#allocation11] sm:$0xff] %vm86_vm2, %v260_v26 }
 0x208   :  { %v353_v27 = vpop.eup %352 }
 0x209   :  { %263 = vrot.lane.b32.xlu1 %v353_v27, %s492_s21 }
 0x20a   :  { %445 = shalt.err (!%p442_p10)
}
 0x20b   :  { %292 = dma.vmem_to_hbm [thread:$0]  %s290_s25, 128, %s579_s7, [#allocation12]  }
 0x20c   :  { %s495_s28 = smov [#allocation10]  }
 0x20d   :  { %s279_s29 = sshll.u32 %s495_s28, 4  ;;  %s280_s29 = int_to_ptr.vmem [resolvable:$true] %s279_s29 }
 0x20e   :  { %s454_s30 = scalar_lea.vmem %s280_s29, 128  ;;  %p459_p12 = scmp.lt.s32.totalorder %s280_s29, %s280_s29 }
 0x20f   :  { %p455_p11 = scmp.ne.s32.totalorder %s280_s29, %s454_s30  ;;  %p460_p13 = scmp.lt.s32.totalorder %s454_s30, %s454_s30 }
 0x211   :  { %p461_p0 = por %p460_p13, %p459_p12 }
 0x213   :  { %p462_p1 = pnand %p461_p0, %p455_p11 }
 0x27b   :  { %v264_v28 = vpop.permute.xlu1 %263 }
 0x27c   :  { %v266_v29 = vmul.f32 %v351_v20, %v264_v28 }
 0x27e   :  { %268 = vrot.lane.b32.xlu1 %v266_v29, %s492_s21 }
 0x2f0   :  { %v269_v30 = vpop.permute.xlu1 %268 }
 0x2f1   :  { %271 = vst.msk [vmem:[#allocation10] sm:$0xff] %vm86_vm2, %v269_v30 }
 0x2f2   :  { %465 = shalt.err (!%p462_p1)
}
 0x2f3   :  { %282 = dma.vmem_to_hbm [thread:$0]  %s280_s29, 128, %s578_s6, [#allocation4]  }
 0x2f4   :  { %480 = dma.done.wait [#allocation4], 128  }
 0x2f5   :  { %481 = vsyncadd [#allocation4], 4294967168 }
 0x2f6   :  { %482 = dma.done.wait [#allocation12], 128  }
 0x2f7   :  { %483 = vsyncadd [#allocation12], 4294967168 }
 0x2f8   :  { %299 = vsyncpa [#allocation3], 1 }
 0x2f9   :  { %300 = vsyncpa [#allocation6], 1 }
 0x2fa   :  { %301 = vsyncpa [#allocation9], 1 }
 0x2fb   :  { %302 = vsyncpa [#allocation4], 1 }
 0x2fc   :  { %303 = vsyncpa [#allocation12], 1 }

</bundles_post_ra>
